<compile_context>
chip_gen: v5e
topology: v5e:2x2
jax: 0.10.0
libtpu: 0.0.40
codegen_flags: <defaults>
</compile_context>

<pallas_src>
import jax
import jax.numpy as jnp
from jax.experimental import pallas as pl
from jax.experimental.pallas import tpu as pltpu

HIDDEN = 64  # fixed by the module definition


def _round_up(n, m):
    return ((n + m - 1) // m) * m


def age_regressor_kernel(x_ref, w1_ref, b1_ref, w2_ref, b2_ref, o_ref):
    # x_ref: (TM, D) f32 | w1_ref: (D, 64) bf16 | b1_ref: (1, 64) f32
    # w2_ref: (1, 64) f32 (W2 row) | b2_ref: (1, 1) f32 in SMEM | o_ref: (TM, 1) f32
    x_bf = x_ref[...].astype(jnp.bfloat16)              # VPU cast, hidden under x DMA
    h = jnp.dot(x_bf, w1_ref[...],
                preferred_element_type=jnp.float32)      # MXU, f32 accumulation
    h = jnp.maximum(h + b1_ref[...], 0.0)                # bias + ReLU in f32 (VPU)
    # Second linear (N=1): VPU multiply + XLU lane reduction instead of a 1-wide MXU pass.
    out = jnp.sum(h * w2_ref[...], axis=-1, keepdims=True) + b2_ref[0, 0]
    o_ref[...] = out.astype(o_ref.dtype)


def _choose_tm(B, D, x_itemsize, max_rows=None, target_tile_bytes=8 * 1024 * 1024):
    """Rows per x tile: ~target_tile_bytes of x per grid step (double-buffered by Pallas),
    rounded to 8 sublanes and capped by the (sublane-padded) batch."""
    rows = max(target_tile_bytes // (D * x_itemsize), 8)
    rows = (rows // 8) * 8
    if max_rows is not None:
        rows = min(rows, _round_up(max_rows, 8))
    rows = min(rows, _round_up(B, 8))
    return max(rows, 8)


def age_regressor(x, w1, b1, w2, b2, *, block_m=None):
    """x: (B, D) f32 (or bf16); w1: (D, 64); b1: (64,); w2: (64, 1); b2: (1,) -> (B, 1) f32."""
    B, D = x.shape
    assert w1.shape == (D, HIDDEN) and w2.shape == (HIDDEN, 1)

    x_itemsize = jnp.dtype(x.dtype).itemsize
    TM = _choose_tm(B, D, x_itemsize, max_rows=block_m)
    grid = (pl.cdiv(B, TM),)   # ragged last tile handled by Pallas masking — no jnp.pad

    # Small operands: W1 in bf16 for the MXU (tiny one-off cast), the rest f32.
    w1_bf = w1.astype(jnp.bfloat16)
    b1_2d = b1.reshape(1, HIDDEN).astype(jnp.float32)
    w2_row = w2.reshape(1, HIDDEN).astype(jnp.float32)   # (64,1) -> (1,64)
    b2_2d = b2.reshape(1, 1).astype(jnp.float32)

    out = pl.pallas_call(
        age_regressor_kernel,
        out_shape=jax.ShapeDtypeStruct((B, 1), jnp.float32),
        grid=grid,
        in_specs=[
            pl.BlockSpec((TM, D), lambda i: (i, 0)),               # x: streamed/pipelined
            pl.BlockSpec((D, HIDDEN), lambda i: (0, 0)),           # W1: VMEM resident
            pl.BlockSpec((1, HIDDEN), lambda i: (0, 0)),           # b1: VMEM resident
            pl.BlockSpec((1, HIDDEN), lambda i: (0, 0)),           # W2 row: VMEM resident
            pl.BlockSpec(memory_space=pltpu.MemorySpace.SMEM),     # b2: SMEM scalar
        ],
        out_specs=pl.BlockSpec((TM, 1), lambda i: (i, 0)),
        compiler_params=pltpu.CompilerParams(
            dimension_semantics=("parallel",),          # megacore sharding of the batch grid
            vmem_limit_bytes=32 * 1024 * 1024,          # x double-buffer <= 16 MiB; safe on v7x's 64 MiB
        ),
        cost_estimate=pl.CostEstimate(
            flops=2 * B * D * HIDDEN + 3 * B * HIDDEN,
            bytes_accessed=(B * D * x_itemsize          # x read once, native dtype
                            + D * HIDDEN * 2            # W1 bf16
                            + 2 * HIDDEN * 4 + 4        # b1, w2 row, b2
                            + B * 4),                   # output
            transcendentals=0,
        ),
    )(x, w1_bf, b1_2d, w2_row, b2_2d)

    return out


def init_params(key, input_dim):
    """Deterministic init mirroring nn.Linear's uniform(-1/sqrt(fan_in), 1/sqrt(fan_in))."""
    k1, k2, k3, k4 = jax.random.split(key, 4)
    bound1 = 1.0 / jnp.sqrt(input_dim)
    bound2 = 1.0 / jnp.sqrt(HIDDEN)
    w1 = jax.random.uniform(k1, (input_dim, HIDDEN), jnp.float32, -bound1, bound1)
    b1 = jax.random.uniform(k2, (HIDDEN,), jnp.float32, -bound1, bound1)
    w2 = jax.random.uniform(k3, (HIDDEN, 1), jnp.float32, -bound2, bound2)
    b2 = jax.random.uniform(k4, (1,), jnp.float32, -bound2, bound2)
    return w1, b1, w2, b2


def reference_f32(x, w1, b1, w2, b2):
    h = jnp.maximum(x @ w1 + b1, 0.0)
    return h @ w2 + b2


def reference_bf16(x, w1, b1, w2, b2):
    # Matches the kernel's numerics: bf16 matmul operands, f32 accumulation/elementwise.
    h = jnp.dot(x.astype(jnp.bfloat16), w1.astype(jnp.bfloat16),
                preferred_element_type=jnp.float32)
    h = jnp.maximum(h + b1, 0.0)
    return jnp.sum(h * w2.reshape(1, HIDDEN), axis=-1, keepdims=True) + b2.reshape(1, 1)


if __name__ == "__main__":
    key = jax.random.PRNGKey(0)
    kx, kp, kx2 = jax.random.split(key, 3)

    input_dim = 32
    w1, b1, w2, b2 = init_params(kp, input_dim)

    # Small single-tile case (matches the module's toy usage).
    batch = 8
    x = jax.random.normal(kx, (batch, input_dim), jnp.float32)
    out = jax.block_until_ready(age_regressor(x, w1, b1, w2, b2))
    assert out.shape == (batch, 1)
    assert jnp.allclose(out, reference_bf16(x, w1, b1, w2, b2), atol=1e-3, rtol=1e-3), \
        "mismatch vs bf16-matched reference"
    assert jnp.allclose(out, reference_f32(x, w1, b1, w2, b2), atol=5e-2, rtol=5e-2), \
        "mismatch vs f32 reference (beyond bf16 tolerance)"

    # Multi-tile gridded case with a ragged final tile (exercises the no-pad masked path).
    x2 = jax.random.normal(kx2, (200, input_dim), jnp.float32)
    out2 = jax.block_until_ready(age_regressor(x2, w1, b1, w2, b2, block_m=64))
    assert out2.shape == (200, 1)
    assert jnp.allclose(out2, reference_bf16(x2, w1, b1, w2, b2), atol=1e-3, rtol=1e-3), \
        "mismatch vs bf16-matched reference (gridded path)"
    assert jnp.allclose(out2, reference_f32(x2, w1, b1, w2, b2), atol=5e-2, rtol=5e-2), \
        "mismatch vs f32 reference (gridded path)"

    print("KERNEL_OK")
</pallas_src>

<mosaic_0001>
module attributes {stable_mosaic.version = 11 : i64} {
  func.func @age_regressor_kernel(%arg0: i32, %arg1: memref<8x32xf32, #tpu.memory_space<vmem>>, %arg2: memref<32x64xbf16, #tpu.memory_space<vmem>>, %arg3: memref<1x64xf32, #tpu.memory_space<vmem>>, %arg4: memref<1x64xf32, #tpu.memory_space<vmem>>, %arg5: memref<1x1xf32, #tpu.memory_space<smem>>, %arg6: memref<8x1xf32, #tpu.memory_space<vmem>>) attributes {dimension_semantics = [#tpu.dimension_semantics<parallel>], iteration_bounds = array<i64: 1>, scalar_prefetch = 0 : i64, scratch_operands = 0 : i64, tpu.core_type = #tpu.core_type<tc>, window_params = [{transform_indices = @transform_0, window_bounds = array<i64: 8, 32>}, {pipeline_mode = #tpu.pipeline_mode<synchronous>, transform_indices = @transform_1, window_bounds = array<i64: 32, 64>}, {pipeline_mode = #tpu.pipeline_mode<synchronous>, transform_indices = @transform_2, window_bounds = array<i64: 1, 64>}, {pipeline_mode = #tpu.pipeline_mode<synchronous>, transform_indices = @transform_3, window_bounds = array<i64: 1, 64>}, {transform_indices = @transform_4, window_bounds = array<i64: 1, 1>}, {transform_indices = @transform_5, window_bounds = array<i64: 8, 1>}]} {
    %c0 = arith.constant 0 : index
    %c0_0 = arith.constant 0 : index
    %0 = vector.load %arg1[%c0, %c0_0] : memref<8x32xf32, #tpu.memory_space<vmem>>, vector<8x32xf32>
    %1 = arith.truncf %0 : vector<8x32xf32> to vector<8x32xbf16>
    %c0_1 = arith.constant 0 : index
    %c0_2 = arith.constant 0 : index
    %2 = vector.load %arg2[%c0_1, %c0_2] : memref<32x64xbf16, #tpu.memory_space<vmem>>, vector<32x64xbf16>
    %cst = arith.constant dense<0.000000e+00> : vector<8x64xf32>
    %3 = tpu.matmul %1, %2, %cst {dimension_numbers = #tpu.dot_dimension_numbers<[1], [0], [0], [1], [0, 0, 1, 1], [], []>} : vector<8x32xbf16>, vector<32x64xbf16>, vector<8x64xf32> -> vector<8x64xf32>
    %c0_3 = arith.constant 0 : index
    %c0_4 = arith.constant 0 : index
    %4 = vector.load %arg3[%c0_3, %c0_4] : memref<1x64xf32, #tpu.memory_space<vmem>>, vector<1x64xf32>
    %5 = vector.broadcast %4 : vector<1x64xf32> to vector<8x64xf32>
    %6 = arith.addf %3, %5 : vector<8x64xf32>
    %cst_5 = arith.constant 0.000000e+00 : f32
    %7 = vector.broadcast %cst_5 : f32 to vector<8x64xf32>
    %8 = arith.maximumf %6, %7 : vector<8x64xf32>
    %c0_6 = arith.constant 0 : index
    %c0_7 = arith.constant 0 : index
    %9 = vector.load %arg4[%c0_6, %c0_7] : memref<1x64xf32, #tpu.memory_space<vmem>>, vector<1x64xf32>
    %10 = vector.broadcast %9 : vector<1x64xf32> to vector<8x64xf32>
    %11 = arith.mulf %8, %10 : vector<8x64xf32>
    %cst_8 = arith.constant dense<0.000000e+00> : vector<8xf32>
    %12 = vector.multi_reduction <add>, %11, %cst_8 [1] : vector<8x64xf32> to vector<8xf32>
    %13 = vector.shape_cast %12 : vector<8xf32> to vector<8x1xf32>
    %c0_9 = arith.constant 0 : index
    %c0_10 = arith.constant 0 : index
    %14 = memref.load %arg5[%c0_9, %c0_10] : memref<1x1xf32, #tpu.memory_space<smem>>
    %15 = vector.broadcast %14 : f32 to vector<8x1xf32>
    %16 = arith.addf %13, %15 : vector<8x1xf32>
    %c0_11 = arith.constant 0 : index
    %c0_12 = arith.constant 0 : index
    %17 = vector.load %arg6[%c0_11, %c0_12] : memref<8x1xf32, #tpu.memory_space<vmem>>, vector<8x1xf32>
    tpu.vector_store %arg6[%c0_11, %c0_12], %16 {strides = array<i32>} : memref<8x1xf32, #tpu.memory_space<vmem>>, vector<8x1xf32>,
    return
  }
  func.func @transform_0(%arg0: i32) -> (i32, i32) {
    %c0_i32 = arith.constant 0 : i32
    %c0_i32_0 = arith.constant 0 : i32
    return %arg0, %c0_i32 : i32, i32
  }
  func.func @transform_1(%arg0: i32) -> (i32, i32) {
    %c0_i32 = arith.constant 0 : i32
    %c0_i32_0 = arith.constant 0 : i32
    %c0_i32_1 = arith.constant 0 : i32
    return %c0_i32, %c0_i32_0 : i32, i32
  }
  func.func @transform_2(%arg0: i32) -> (i32, i32) {
    %c0_i32 = arith.constant 0 : i32
    %c0_i32_0 = arith.constant 0 : i32
    %c0_i32_1 = arith.constant 0 : i32
    return %c0_i32, %c0_i32_0 : i32, i32
  }
  func.func @transform_3(%arg0: i32) -> (i32, i32) {
    %c0_i32 = arith.constant 0 : i32
    %c0_i32_0 = arith.constant 0 : i32
    %c0_i32_1 = arith.constant 0 : i32
    return %c0_i32, %c0_i32_0 : i32, i32
  }
  func.func @transform_4(%arg0: i32) -> (i32, i32) {
    %c0_i32 = arith.constant 0 : i32
    %c0_i32_0 = arith.constant 0 : i32
    %c0_i32_1 = arith.constant 0 : i32
    return %c0_i32, %c0_i32_0 : i32, i32
  }
  func.func @transform_5(%arg0: i32) -> (i32, i32) {
    %c0_i32 = arith.constant 0 : i32
    %c0_i32_0 = arith.constant 0 : i32
    return %arg0, %c0_i32 : i32, i32
  }
}

</mosaic_0001>

<bundles_post_ra>
// kernel: tpu_custom_call.1
= control target key start
LH: loop header
LB: loop body
LE: loop exit
PB: predicated region body
PF: predicated region fallthrough
CT: control target
= control target key end

     0   :  { %11 = vsyncpa [#allocation4], 0  ;;  %s233_s0 = inlined_call_operand.hbm [shape: f32[8,32], index: 0, kind: input, shape index: {}]   ;;  %s234_s1 = inlined_call_operand.hbm [shape: bf16[32,64], index: 1, kind: input, shape index: {}]   ;;  %s235_s2 = inlined_call_operand.vmem [shape: f32[1,64], index: 2, kind: input, shape index: {}]   ;;  %s236_s3 = inlined_call_operand.vmem [shape: f32[1,64], index: 3, kind: input, shape index: {}]   ;;  %s237_s4 = inlined_call_operand.<no memory space> [shape: f32[1,1], index: 4, kind: input, shape index: {}]   ;;  %s238_s5 = inlined_call_operand.vmem [shape: f32[8,1], index: 5, kind: output, shape index: {}]  }
   0x1   :  { %s18_s20 = sshll.u32 %s233_s0, 4  ;;  %s19_s20 = int_to_ptr.hbm [resolvable:$true] %s18_s20 }
   0x2   :  { %12 = vsyncpa [#allocation6], 0  ;;  %s181_s21 = smov [#allocation3]   ;;  %s28_s25 = sshll.u32 %s234_s1, 4  ;;  %s29_s25 = int_to_ptr.hbm [resolvable:$true] %s28_s25 }
   0x3   :  { %s20_s22 = sshll.u32 %s181_s21, 4  ;;  %s182_s26 = smov [#allocation5]   ;;  %s21_s22 = int_to_ptr.vmem [resolvable:$true] %s20_s22 }
   0x4   :  { %23 = dma.hbm_to_vmem [thread:$0]  %s19_s20, 128, %s21_s22, [#allocation4]  }
   0x5   :  { %s30_s27 = sshll.u32 %s182_s26, 4  ;;  %s183_s28 = smov 64   ;;  %s31_s27 = int_to_ptr.vmem [resolvable:$true] %s30_s27 }
   0x6   :  { %s184_s29 = smov 4  }
   0x7   :  { %36 = dma.hbm_to_vmem [thread:$0]  %s29_s25, 256, %s31_s27, [#allocation6], %s183_s28, %s183_s28, %s184_s29  }
   0x8   :  { %177 = dma.done.wait [#allocation4], 128  }
   0x9   :  { %178 = vsyncadd [#allocation4], 4294967168 }
   0xa   :  { %179 = dma.done.wait [#allocation6], 256  }
   0xb   :  { %180 = vsyncadd [#allocation6], 4294967040  ;;  %v122_v0 = vld [vmem:[#allocation5 + $0x8] sm:$0xff]  ;;  %v121_v1 = vld [vmem:[#allocation5] sm:$0xff]  ;;  %vm74_vm0 = vcmask 261120   ;;  %vm97_vm1 = vcmask 523264   ;;  %v102_v12 = vstv %s237_s4 }
   0xc   :  { %84 = vmatpush.bf16.msra.mxu0 %v122_v0  ;;  %v52_v2 = vld [vmem:[#allocation3] sm:$0xff]  ;;  %vm104_vm2 = vcmask 7168  }
   0xd   :  { %v53_v3 = vpack.c.bf16 %v52_v2, %v52_v2  ;;  %v127_v4 = vld [vmem:[%s235_s2] ss:$0 sm:$0xff] }
   0xe   :  { %v128_v7 = vld [vmem:[%s236_s3] ss:$0 sm:$0xff] }
  0x10   :  { %85 = vmatpush.bf16.msra.mxu0 %v121_v1 }
  0x13   :  { %120 = vmatmul.msk.bf16.vlgmr.msra.gmra.mxu0 %vm74_vm0, %v53_v3 }
  0x90   :  { %v87_v5 = vpop.f32.mrf.mxu0 }
  0x91   :  { %v88_v6 = vadd.f32 %v127_v4, %v87_v5 }
  0x93   :  { %v91_v8 = vmax.f32 %v88_v6, 0.0 }
  0x95   :  { %v96_v9 = vmul.f32 %v128_v7, %v91_v8 }
  0x97   :  { %v98_v10 = vsel %vm97_vm1, %v96_v9, 0.0 }
  0x98   :  { %v89_v11 = vpop.f32.mrf.mxu0  ;;  %99 = vadd.xlane.f32.xlu0 %v98_v10 }
 0x10b   :  { %v100_v13 = vpop.xlane.xlu0 %99 }
 0x10c   :  { %v103_v14 = vadd.f32 %v102_v12, %v100_v13 }
 0x10e   :  { %105 = vst.msk [vmem:[%s238_s5] sm:$0xff] %vm104_vm2, %v103_v14 }
 0x10f   :  { %110 = vsyncpa [#allocation4], 1 }
 0x110   :  { %111 = vsyncpa [#allocation6], 1 }

</bundles_post_ra>
